<compile_context>
chip_gen: v6e
topology: v6e:2x2x1
jax: 0.10.0
libtpu: 0.0.40
codegen_flags: <defaults>
</compile_context>

<pallas_src>
import jax
import jax.numpy as jnp
from jax.experimental import pallas as pl
from jax.experimental.pallas import tpu as pltpu


# ----------------------------------------------------------------------------
# Kernel 1: synthetic GPT block hot path
#   out = LayerNorm( h0 + (tanh(h0 @ W1 + b1) @ W2 + b2) )
# Grid: (row tiles i [parallel], hidden(4D) chunks j [arbitrary, reduction]).
# Per step j: a_j = tanh(h0 @ W1[:, j] + b1[j]);  acc += a_j @ W2[j, :]
# Epilogue (last j): residual + LayerNorm + affine, single bf16 store.
# ----------------------------------------------------------------------------
def gpt_block_kernel(h_ref, w1_ref, b1_ref, w2_ref, b2_ref, g_ref, bta_ref,
                     o_ref, acc_ref, h0b_ref):
    j = pl.program_id(1)

    @pl.when(j == 0)
    def _init():
        acc_ref[...] = jnp.zeros_like(acc_ref)
        # Cache the bf16 MXU operand once per row tile (saves (H/TH - 1)
        # full-tile f32->bf16 casts that were burning VALU slots).
        h0b_ref[...] = h_ref[...].astype(jnp.bfloat16)

    pre = jnp.dot(h0b_ref[...], w1_ref[...],
                  preferred_element_type=jnp.float32) + b1_ref[...]
    a = jnp.tanh(pre)                                  # f32 EUP (v5e-safe)
    acc_ref[...] += jnp.dot(a.astype(jnp.bfloat16), w2_ref[...],
                            preferred_element_type=jnp.float32)

    @pl.when(j == pl.num_programs(1) - 1)
    def _epilogue():
        h = h_ref[...] + acc_ref[...] + b2_ref[...]    # residual + bias, f32
        mu = jnp.mean(h, axis=-1, keepdims=True)
        var = jnp.mean((h - mu) ** 2, axis=-1, keepdims=True)
        hn = (h - mu) * jax.lax.rsqrt(var + 1e-5)
        o_ref[...] = (hn * g_ref[...] + bta_ref[...]).astype(o_ref.dtype)


# ----------------------------------------------------------------------------
# Kernel 2: reward head on the (already extracted) last-token rows.
#   reward[b] = sum(last[b, :] * w) + bias      (single grid step, VPU reduce)
# ----------------------------------------------------------------------------
def reward_head_kernel(h_ref, w_ref, b_ref, o_ref):
    r = jnp.sum(h_ref[...].astype(jnp.float32) * w_ref[...],
                axis=-1, keepdims=True) + b_ref[...]        # (B, 1) f32
    o_ref[...] = r.astype(o_ref.dtype)


def _pick_tile(dim, target, align):
    """Largest multiple of `align` that divides `dim`, <= target; else full dim."""
    t = min(target, dim)
    t = (t // align) * align
    while t >= align:
        if dim % t == 0:
            return t
        t -= align
    return dim


def _vmem_capacity_bytes():
    try:
        return int(pltpu.get_tpu_info().vmem_capacity_bytes)
    except Exception:
        return 64 * 1024 * 1024   # conservative (v7x per-TC) fallback


def gpt_block(h0, w1, b1, w2, b2, gamma, beta):
    N, D = h0.shape
    H = w1.shape[1]

    vmem_cap = _vmem_capacity_bytes()
    if vmem_cap >= (96 << 20):     # v5e / v6e class (128 MiB physical VMEM)
        tn_target, th_target = 512, 512
    else:                          # v7x class (64 MiB per TensorCore)
        tn_target, th_target = 384, 256

    TN = _pick_tile(N, tn_target, 8)     # row tile   (sublane-aligned)
    # Keep >= 2 row-tile iterations so the "parallel" axis can feed both
    # TensorCores on v7x (a single i step would idle one TC).
    if TN == N and N >= 16:
        half = _pick_tile(N, N // 2, 8)
        if half < N:
            TN = half
    TH = _pick_tile(H, th_target, 128)   # 4D chunk   (lane-aligned)
    grid = (N // TN, H // TH)

    # Explicit scoped-VMEM budget for the chosen tiles (defaults are only
    # 16 MiB on v5e / 32 MiB on v6e+, too small for the large tiles we want).
    tile_bytes = (
        2 * TN * D * 4            # h0 row tile, f32, double-buffered
        + 2 * TN * D * 2          # hidden out tile, bf16, double-buffered
        + TN * D * 4              # f32 accumulator scratch
        + TN * D * 2              # cached bf16 h0 scratch
        + 2 * D * TH * 2          # W1 chunk, bf16, double-buffered
        + 2 * TH * D * 2          # W2 chunk, bf16, double-buffered
        + 2 * (TH + 3 * D + 8) * 4 * 2   # b1/b2/gamma/beta blocks
    )
    vmem_limit = int(tile_bytes * 1.25) + (4 << 20)
    vmem_limit = max(vmem_limit, 32 << 20)
    vmem_limit = min(vmem_limit, vmem_cap - (8 << 20))

    flops = 4 * N * D * H                        # two matmuls, 2*N*D*H each
    w_bytes = w1.size * w1.dtype.itemsize + w2.size * w2.dtype.itemsize
    bytes_accessed = (N * D * 4                  # h0 read
                      + N * D * 2                # bf16 hidden write
                      + (N // TN) * w_bytes      # W1/W2 re-streamed per row tile
                      + (H + 3 * D) * 4)         # biases / LN params

    return pl.pallas_call(
        gpt_block_kernel,
        out_shape=jax.ShapeDtypeStruct((N, D), jnp.bfloat16),
        grid_spec=pltpu.PrefetchScalarGridSpec(
            num_scalar_prefetch=0,
            grid=grid,
            in_specs=[
                pl.BlockSpec((TN, D), lambda i, j: (i, 0)),   # h0 row tile (resident over j)
                pl.BlockSpec((D, TH), lambda i, j: (0, j)),   # W1 column chunk
                pl.BlockSpec((1, TH), lambda i, j: (0, j)),   # b1 chunk
                pl.BlockSpec((TH, D), lambda i, j: (j, 0)),   # W2 row chunk
                pl.BlockSpec((1, D), lambda i, j: (0, 0)),    # b2   (resident)
                pl.BlockSpec((1, D), lambda i, j: (0, 0)),    # gamma
                pl.BlockSpec((1, D), lambda i, j: (0, 0)),    # beta
            ],
            out_specs=pl.BlockSpec((TN, D), lambda i, j: (i, 0)),
            scratch_shapes=[
                pltpu.VMEM((TN, D), jnp.float32),     # MLP accumulator
                pltpu.VMEM((TN, D), jnp.bfloat16),    # cached bf16 h0 tile
            ],
        ),
        compiler_params=pltpu.CompilerParams(
            dimension_semantics=("parallel", "arbitrary"),
            vmem_limit_bytes=vmem_limit,
        ),
        cost_estimate=pl.CostEstimate(
            flops=flops, transcendentals=N * H, bytes_accessed=bytes_accessed),
    )(h0, w1, b1, w2, b2, gamma, beta)


def reward_head(last_hidden, w_row, bias):
    """last_hidden (B, D) bf16, w_row (1, D) f32, bias (1, 1) f32 -> (B, 1) f32."""
    B, D = last_hidden.shape
    return pl.pallas_call(
        reward_head_kernel,
        out_shape=jax.ShapeDtypeStruct((B, 1), jnp.float32),
        in_specs=[pl.BlockSpec(memory_space=pltpu.MemorySpace.VMEM)] * 3,
        out_specs=pl.BlockSpec(memory_space=pltpu.MemorySpace.VMEM),
    )(last_hidden, w_row, bias)


def init_params(key, vocab, n_ctx, n_embd):
    ks = jax.random.split(key, 8)
    hdim = 4 * n_embd
    scale = 0.02
    return {
        "tok_emb": scale * jax.random.normal(ks[0], (vocab, n_embd), jnp.float32),
        "pos_emb": scale * jax.random.normal(ks[1], (n_ctx, n_embd), jnp.float32),
        # matmul weights stored bf16 (MXU operands); biases / LN params in f32
        "w1": (scale * jax.random.normal(ks[2], (n_embd, hdim), jnp.float32)
               ).astype(jnp.bfloat16),
        "b1": jnp.zeros((1, hdim), jnp.float32),
        "w2": (scale * jax.random.normal(ks[3], (hdim, n_embd), jnp.float32)
               ).astype(jnp.bfloat16),
        "b2": jnp.zeros((1, n_embd), jnp.float32),
        "ln_g": jnp.ones((1, n_embd), jnp.float32),
        "ln_b": jnp.zeros((1, n_embd), jnp.float32),
        # reward head: PyTorch nn.Linear(n_embd, 1) weight is (1, n_embd)
        "rw_w": scale * jax.random.normal(ks[4], (1, n_embd), jnp.float32),
        "rw_b": jnp.zeros((1, 1), jnp.float32),
    }


@jax.jit
def reward_model_forward(x_ids, params):
    B, T = x_ids.shape
    D = params["tok_emb"].shape[1]
    # --- gpt_model(x): embedding glue + Pallas transformer-block hot path ---
    tok = jnp.take(params["tok_emb"], x_ids, axis=0)            # (B, T, D)
    pos = params["pos_emb"][:T][None, :, :]                     # (1, T, D)
    h0 = (tok + pos).reshape(B * T, D)                          # (B*T, D), f32
    hidden = gpt_block(
        h0, params["w1"], params["b1"], params["w2"], params["b2"],
        params["ln_g"], params["ln_b"],
    )                                                           # (B*T, D) bf16
    # --- RewardModel head: last-token rows + Linear(n_embd, 1) ---
    # Tiny strided slice (B*D*2 bytes) done as XLA glue; the reduction itself
    # is a single-step Pallas kernel over all B rows.
    last = hidden.reshape(B, T, D)[:, -1, :]                    # (B, D) bf16
    reward_logits = reward_head(last, params["rw_w"], params["rw_b"])
    return reward_logits                                        # (B, 1) f32


if __name__ == "__main__":
    # Small, TPU-friendly toy shapes (n_embd multiple of 128 for lane density).
    B, T, D, V = 2, 8, 256, 512
    key = jax.random.PRNGKey(0)
    k_params, k_x = jax.random.split(key)
    params = init_params(k_params, vocab=V, n_ctx=T, n_embd=D)
    x = jax.random.randint(k_x, (B, T), 0, V, dtype=jnp.int32)  # token ids

    out = reward_model_forward(x, params)
    out = jax.block_until_ready(out)
    assert out.shape == (B, 1) and out.dtype == jnp.float32

    # pure-JAX reference mirroring the kernels' numerics
    # (bf16 MXU operands, f32 accumulate, f32 residual/LN, bf16 hidden).
    tok = jnp.take(params["tok_emb"], x, axis=0) + params["pos_emb"][:T][None]
    h0 = tok.reshape(B * T, D)
    a = jnp.tanh(jnp.dot(h0.astype(jnp.bfloat16), params["w1"],
                         preferred_element_type=jnp.float32) + params["b1"])
    mlp = jnp.dot(a.astype(jnp.bfloat16), params["w2"],
                  preferred_element_type=jnp.float32) + params["b2"]
    h = h0 + mlp
    mu = h.mean(-1, keepdims=True)
    var = ((h - mu) ** 2).mean(-1, keepdims=True)
    hn = (h - mu) * jax.lax.rsqrt(var + 1e-5) * params["ln_g"] + params["ln_b"]
    hidden_bf16 = hn.astype(jnp.bfloat16)
    last = hidden_bf16.reshape(B, T, D)[:, -1, :].astype(jnp.float32)
    ref = jnp.sum(last * params["rw_w"], axis=-1, keepdims=True) + params["rw_b"]
    assert jnp.allclose(out, ref, atol=5e-3, rtol=5e-3), (out, ref)

    print("KERNEL_OK")
</pallas_src>

<mosaic_0001>
module attributes {stable_mosaic.version = 11 : i64} {
  func.func @reward_head_kernel(%arg0: memref<2x256xbf16, #tpu.memory_space<vmem>>, %arg1: memref<1x256xf32, #tpu.memory_space<vmem>>, %arg2: memref<1x1xf32, #tpu.memory_space<vmem>>, %arg3: memref<2x1xf32, #tpu.memory_space<vmem>>) attributes {dimension_semantics = [], scalar_prefetch = 0 : i64, scratch_operands = 0 : i64, tpu.core_type = #tpu.core_type<tc>} {
    %c0 = arith.constant 0 : index
    %c0_0 = arith.constant 0 : index
    %0 = vector.load %arg0[%c0, %c0_0] : memref<2x256xbf16, #tpu.memory_space<vmem>>, vector<2x256xbf16>
    %1 = arith.extf %0 : vector<2x256xbf16> to vector<2x256xf32>
    %c0_1 = arith.constant 0 : index
    %c0_2 = arith.constant 0 : index
    %2 = vector.load %arg1[%c0_1, %c0_2] : memref<1x256xf32, #tpu.memory_space<vmem>>, vector<1x256xf32>
    %3 = vector.broadcast %2 : vector<1x256xf32> to vector<2x256xf32>
    %4 = arith.mulf %1, %3 : vector<2x256xf32>
    %cst = arith.constant dense<0.000000e+00> : vector<2xf32>
    %5 = vector.multi_reduction <add>, %4, %cst [1] : vector<2x256xf32> to vector<2xf32>
    %6 = vector.shape_cast %5 : vector<2xf32> to vector<2x1xf32>
    %c0_3 = arith.constant 0 : index
    %c0_4 = arith.constant 0 : index
    %7 = vector.load %arg2[%c0_3, %c0_4] : memref<1x1xf32, #tpu.memory_space<vmem>>, vector<1x1xf32>
    %8 = vector.broadcast %7 : vector<1x1xf32> to vector<2x1xf32>
    %9 = arith.addf %6, %8 : vector<2x1xf32>
    %c0_5 = arith.constant 0 : index
    %c0_6 = arith.constant 0 : index
    %10 = vector.load %arg3[%c0_5, %c0_6] : memref<2x1xf32, #tpu.memory_space<vmem>>, vector<2x1xf32>
    tpu.vector_store %arg3[%c0_5, %c0_6], %9 {strides = array<i32>} : memref<2x1xf32, #tpu.memory_space<vmem>>, vector<2x1xf32>,
    return
  }
}

module attributes {stable_mosaic.version = 11 : i64} {
  func.func @gpt_block_kernel(%arg0: i32, %arg1: i32, %arg2: memref<8x256xf32, #tpu.memory_space<vmem>>, %arg3: memref<256x256xbf16, #tpu.memory_space<vmem>>, %arg4: memref<1x256xf32, #tpu.memory_space<vmem>>, %arg5: memref<256x256xbf16, #tpu.memory_space<vmem>>, %arg6: memref<1x256xf32, #tpu.memory_space<vmem>>, %arg7: memref<1x256xf32, #tpu.memory_space<vmem>>, %arg8: memref<1x256xf32, #tpu.memory_space<vmem>>, %arg9: memref<8x256xbf16, #tpu.memory_space<vmem>>, %arg10: memref<8x256xf32, #tpu.memory_space<vmem>>, %arg11: memref<8x256xbf16, #tpu.memory_space<vmem>>) attributes {dimension_semantics = [#tpu.dimension_semantics<parallel>, #tpu.dimension_semantics<arbitrary>], iteration_bounds = array<i64: 2, 4>, scalar_prefetch = 0 : i64, scratch_operands = 2 : i64, tpu.core_type = #tpu.core_type<tc>, window_params = [{transform_indices = @transform_0, window_bounds = array<i64: 8, 256>}, {transform_indices = @transform_1, window_bounds = array<i64: 256, 256>}, {transform_indices = @transform_2, window_bounds = array<i64: 1, 256>}, {transform_indices = @transform_3, window_bounds = array<i64: 256, 256>}, {pipeline_mode = #tpu.pipeline_mode<synchronous>, transform_indices = @transform_4, window_bounds = array<i64: 1, 256>}, {pipeline_mode = #tpu.pipeline_mode<synchronous>, transform_indices = @transform_5, window_bounds = array<i64: 1, 256>}, {pipeline_mode = #tpu.pipeline_mode<synchronous>, transform_indices = @transform_6, window_bounds = array<i64: 1, 256>}, {transform_indices = @transform_7, window_bounds = array<i64: 8, 256>}]} {
    %c0_i32 = arith.constant 0 : i32
    %0 = arith.cmpi eq, %arg1, %c0_i32 : i32
    %1 = arith.extui %0 : i1 to i32
    %c0_i32_0 = arith.constant 0 : i32
    %2 = arith.cmpi ne, %1, %c0_i32_0 : i32
    scf.if %2 {
      %cst_14 = arith.constant 0.000000e+00 : f32
      %19 = vector.broadcast %cst_14 : f32 to vector<8x256xf32>
      %c0_15 = arith.constant 0 : index
      %c0_16 = arith.constant 0 : index
      %20 = vector.load %arg10[%c0_15, %c0_16] : memref<8x256xf32, #tpu.memory_space<vmem>>, vector<8x256xf32>
      tpu.vector_store %arg10[%c0_15, %c0_16], %19 {strides = array<i32>} : memref<8x256xf32, #tpu.memory_space<vmem>>, vector<8x256xf32>,
      %c0_17 = arith.constant 0 : index
      %c0_18 = arith.constant 0 : index
      %21 = vector.load %arg2[%c0_17, %c0_18] : memref<8x256xf32, #tpu.memory_space<vmem>>, vector<8x256xf32>
      %22 = arith.truncf %21 : vector<8x256xf32> to vector<8x256xbf16>
      %c0_19 = arith.constant 0 : index
      %c0_20 = arith.constant 0 : index
      %23 = vector.load %arg11[%c0_19, %c0_20] : memref<8x256xbf16, #tpu.memory_space<vmem>>, vector<8x256xbf16>
      tpu.vector_store %arg11[%c0_19, %c0_20], %22 {strides = array<i32>} : memref<8x256xbf16, #tpu.memory_space<vmem>>, vector<8x256xbf16>,
    } else {
    }
    %c0 = arith.constant 0 : index
    %c0_1 = arith.constant 0 : index
    %3 = vector.load %arg11[%c0, %c0_1] : memref<8x256xbf16, #tpu.memory_space<vmem>>, vector<8x256xbf16>
    %c0_2 = arith.constant 0 : index
    %c0_3 = arith.constant 0 : index
    %4 = vector.load %arg3[%c0_2, %c0_3] : memref<256x256xbf16, #tpu.memory_space<vmem>>, vector<256x256xbf16>
    %cst = arith.constant dense<0.000000e+00> : vector<8x256xf32>
    %5 = tpu.matmul %3, %4, %cst {dimension_numbers = #tpu.dot_dimension_numbers<[1], [0], [0], [1], [0, 0, 1, 1], [], []>} : vector<8x256xbf16>, vector<256x256xbf16>, vector<8x256xf32> -> vector<8x256xf32>
    %c0_4 = arith.constant 0 : index
    %c0_5 = arith.constant 0 : index
    %6 = vector.load %arg4[%c0_4, %c0_5] : memref<1x256xf32, #tpu.memory_space<vmem>>, vector<1x256xf32>
    %7 = vector.broadcast %6 : vector<1x256xf32> to vector<8x256xf32>
    %8 = arith.addf %5, %7 : vector<8x256xf32>
    %9 = math.tanh %8 : vector<8x256xf32>
    %c0_6 = arith.constant 0 : index
    %c0_7 = arith.constant 0 : index
    %10 = vector.load %arg10[%c0_6, %c0_7] : memref<8x256xf32, #tpu.memory_space<vmem>>, vector<8x256xf32>
    %11 = arith.truncf %9 : vector<8x256xf32> to vector<8x256xbf16>
    %c0_8 = arith.constant 0 : index
    %c0_9 = arith.constant 0 : index
    %12 = vector.load %arg5[%c0_8, %c0_9] : memref<256x256xbf16, #tpu.memory_space<vmem>>, vector<256x256xbf16>
    %cst_10 = arith.constant dense<0.000000e+00> : vector<8x256xf32>
    %13 = tpu.matmul %11, %12, %cst_10 {dimension_numbers = #tpu.dot_dimension_numbers<[1], [0], [0], [1], [0, 0, 1, 1], [], []>} : vector<8x256xbf16>, vector<256x256xbf16>, vector<8x256xf32> -> vector<8x256xf32>
    %14 = arith.addf %10, %13 : vector<8x256xf32>
    %c0_11 = arith.constant 0 : index
    %c0_12 = arith.constant 0 : index
    %15 = vector.load %arg10[%c0_11, %c0_12] : memref<8x256xf32, #tpu.memory_space<vmem>>, vector<8x256xf32>
    tpu.vector_store %arg10[%c0_11, %c0_12], %14 {strides = array<i32>} : memref<8x256xf32, #tpu.memory_space<vmem>>, vector<8x256xf32>,
    %c3_i32 = arith.constant 3 : i32
    %16 = arith.cmpi eq, %arg1, %c3_i32 : i32
    %17 = arith.extui %16 : i1 to i32
    %c0_i32_13 = arith.constant 0 : i32
    %18 = arith.cmpi ne, %17, %c0_i32_13 : i32
    scf.if %18 {
      %c0_14 = arith.constant 0 : index
      %c0_15 = arith.constant 0 : index
      %19 = vector.load %arg2[%c0_14, %c0_15] : memref<8x256xf32, #tpu.memory_space<vmem>>, vector<8x256xf32>
      %c0_16 = arith.constant 0 : index
      %c0_17 = arith.constant 0 : index
      %20 = vector.load %arg10[%c0_16, %c0_17] : memref<8x256xf32, #tpu.memory_space<vmem>>, vector<8x256xf32>
      %21 = arith.addf %19, %20 : vector<8x256xf32>
      %c0_18 = arith.constant 0 : index
      %c0_19 = arith.constant 0 : index
      %22 = vector.load %arg6[%c0_18, %c0_19] : memref<1x256xf32, #tpu.memory_space<vmem>>, vector<1x256xf32>
      %23 = vector.broadcast %22 : vector<1x256xf32> to vector<8x256xf32>
      %24 = arith.addf %21, %23 : vector<8x256xf32>
      %cst_20 = arith.constant dense<0.000000e+00> : vector<8xf32>
      %25 = vector.multi_reduction <add>, %24, %cst_20 [1] : vector<8x256xf32> to vector<8xf32>
      %26 = vector.shape_cast %25 : vector<8xf32> to vector<8x1xf32>
      %cst_21 = arith.constant 2.560000e+02 : f32
      %27 = vector.broadcast %cst_21 : f32 to vector<8x1xf32>
      %28 = arith.divf %26, %27 : vector<8x1xf32>
      %29 = vector.broadcast %28 : vector<8x1xf32> to vector<8x256xf32>
      %30 = arith.subf %24, %29 : vector<8x256xf32>
      %31 = arith.mulf %30, %30 : vector<8x256xf32>
      %cst_22 = arith.constant dense<0.000000e+00> : vector<8xf32>
      %32 = vector.multi_reduction <add>, %31, %cst_22 [1] : vector<8x256xf32> to vector<8xf32>
      %33 = vector.shape_cast %32 : vector<8xf32> to vector<8x1xf32>
      %cst_23 = arith.constant 2.560000e+02 : f32
      %34 = vector.broadcast %cst_23 : f32 to vector<8x1xf32>
      %35 = arith.divf %33, %34 : vector<8x1xf32>
      %36 = vector.broadcast %28 : vector<8x1xf32> to vector<8x256xf32>
      %37 = arith.subf %24, %36 : vector<8x256xf32>
      %cst_24 = arith.constant 9.99999974E-6 : f32
      %38 = vector.broadcast %cst_24 : f32 to vector<8x1xf32>
      %39 = arith.addf %35, %38 : vector<8x1xf32>
      %40 = math.rsqrt %39 : vector<8x1xf32>
      %41 = vector.broadcast %40 : vector<8x1xf32> to vector<8x256xf32>
      %42 = arith.mulf %37, %41 : vector<8x256xf32>
      %c0_25 = arith.constant 0 : index
      %c0_26 = arith.constant 0 : index
      %43 = vector.load %arg7[%c0_25, %c0_26] : memref<1x256xf32, #tpu.memory_space<vmem>>, vector<1x256xf32>
      %44 = vector.broadcast %43 : vector<1x256xf32> to vector<8x256xf32>
      %45 = arith.mulf %42, %44 : vector<8x256xf32>
      %c0_27 = arith.constant 0 : index
      %c0_28 = arith.constant 0 : index
      %46 = vector.load %arg8[%c0_27, %c0_28] : memref<1x256xf32, #tpu.memory_space<vmem>>, vector<1x256xf32>
      %47 = vector.broadcast %46 : vector<1x256xf32> to vector<8x256xf32>
      %48 = arith.addf %45, %47 : vector<8x256xf32>
      %49 = arith.truncf %48 : vector<8x256xf32> to vector<8x256xbf16>
      %c0_29 = arith.constant 0 : index
      %c0_30 = arith.constant 0 : index
      %50 = vector.load %arg9[%c0_29, %c0_30] : memref<8x256xbf16, #tpu.memory_space<vmem>>, vector<8x256xbf16>
      tpu.vector_store %arg9[%c0_29, %c0_30], %49 {strides = array<i32>} : memref<8x256xbf16, #tpu.memory_space<vmem>>, vector<8x256xbf16>,
    } else {
    }
    return
  }
  func.func @transform_0(%arg0: i32, %arg1: i32) -> (i32, i32) {
    %c0_i32 = arith.constant 0 : i32
    %c0_i32_0 = arith.constant 0 : i32
    return %arg0, %c0_i32 : i32, i32
  }
  func.func @transform_1(%arg0: i32, %arg1: i32) -> (i32, i32) {
    %c0_i32 = arith.constant 0 : i32
    %c0_i32_0 = arith.constant 0 : i32
    return %c0_i32, %arg1 : i32, i32
  }
  func.func @transform_2(%arg0: i32, %arg1: i32) -> (i32, i32) {
    %c0_i32 = arith.constant 0 : i32
    %c0_i32_0 = arith.constant 0 : i32
    return %c0_i32, %arg1 : i32, i32
  }
  func.func @transform_3(%arg0: i32, %arg1: i32) -> (i32, i32) {
    %c0_i32 = arith.constant 0 : i32
    %c0_i32_0 = arith.constant 0 : i32
    return %arg1, %c0_i32 : i32, i32
  }
  func.func @transform_4(%arg0: i32, %arg1: i32) -> (i32, i32) {
    %c0_i32 = arith.constant 0 : i32
    %c0_i32_0 = arith.constant 0 : i32
    %c0_i32_1 = arith.constant 0 : i32
    return %c0_i32, %c0_i32_0 : i32, i32
  }
  func.func @transform_5(%arg0: i32, %arg1: i32) -> (i32, i32) {
    %c0_i32 = arith.constant 0 : i32
    %c0_i32_0 = arith.constant 0 : i32
    %c0_i32_1 = arith.constant 0 : i32
    return %c0_i32, %c0_i32_0 : i32, i32
  }
  func.func @transform_6(%arg0: i32, %arg1: i32) -> (i32, i32) {
    %c0_i32 = arith.constant 0 : i32
    %c0_i32_0 = arith.constant 0 : i32
    %c0_i32_1 = arith.constant 0 : i32
    return %c0_i32, %c0_i32_0 : i32, i32
  }
  func.func @transform_7(%arg0: i32, %arg1: i32) -> (i32, i32) {
    %c0_i32 = arith.constant 0 : i32
    %c0_i32_0 = arith.constant 0 : i32
    return %arg0, %c0_i32 : i32, i32
  }
}

</mosaic_0001>

<bundles_post_ra>
// kernel: reward_model_forward.3
= control target key start
LH: loop header
LB: loop body
LE: loop exit
PB: predicated region body
PF: predicated region fallthrough
CT: control target
= control target key end

     0   :  { %v20_v0 = vlaneseq  ;;  %v71_v1 = vmov 1983009808   ;;  %vm49_vm0 = vcmask 1041408   ;;  %vm63_vm1 = vcmask 1024   ;;  %s104_s1 = inlined_call_operand.vmem [shape: f32[1,256], index: 1, kind: input, shape index: {}]   ;;  %s105_s2 = inlined_call_operand.<no memory space> [shape: f32[1,1], index: 2, kind: input, shape index: {}]   ;;  %s106_s0 = inlined_call_operand.vmem [shape: bf16[2,256], index: 0, kind: input, shape index: {}]   ;;  %s107_s3 = inlined_call_operand.vmem [shape: f32[2,1], index: 3, kind: output, shape index: {}]  }
   0x1   :  { %v30_v2 = vunpack.c.l.s4 %v71_v1  ;;  %v8_v3 = vstv %s105_s2  ;;  %v18_v5 = vld [vmem:[%s104_s1] sm:$0x3] }
   0x2   :  { %v21_v4 = vshrl.u32 %v20_v0, 7  ;;  %9 = vst [vmem:[#allocation2] sm:$0x1] %v8_v3  ;;  %v16_v9 = vld [vmem:[%s106_s0] sm:$0x3] }
   0x3   :  { %v31_v6 = vunpack.c.0.s8 %v30_v2  ;;  %v17_v13 = vunpack.c.l.bf16 %v16_v9 }
   0x4   :  { %v22_v7 = vsub.s32 0, %v21_v4  ;;  %v26_v8 = vsub.s32 1, %v21_v4 }
   0x5   :  { %v34_v12 = vsub.s32 %v31_v6, %v21_v4 }
   0x6   :  { %v23_v10 = vrot.slane %v18_v5, %v22_v7  ;;  %v27_v11 = vrot.slane %v18_v5, %v26_v8 }
   0x8   :  { %v28_v14 = vcombine.low %v23_v10, %v27_v11 }
   0x9   :  { %v69_v22 = vld [vmem:[#allocation2] ss:$0 sm:$0xff] }
   0xa   :  { %v35_v15 = vrot.slane %v28_v14, %v34_v12 }
   0xc   :  { %v37_v16 = vmul.f32 %v35_v15, %v17_v13 }
   0xe   :  { %v45_v17 = vrot.slane %v37_v16, %v34_v12 }
  0x10   :  { %v46_v18 = vcombine.high %v45_v17, %v45_v17  ;;  %v50_v19 = vsel %vm49_vm0, %v45_v17, 0.0 }
  0x12   :  { %v51_v20 = vsel %vm49_vm0, %v46_v18, 0.0 }
  0x13   :  { %v52_v21 = vadd.f32 %v51_v20, %v50_v19 }
  0x15   :  { %53 = vadd.xlane.f32.xlu0 %v52_v21 }
  0x9e   :  { %v54_v23 = vpop.xlane.xlu0 %53 }
  0x9f   :  { %v62_v24 = vadd.f32 %v69_v22, %v54_v23 }
  0xa1   :  { %64 = vst.msk [vmem:[%s107_s3] sm:$0x3] %vm63_vm1, %v62_v24 }

// kernel: reward_model_forward.2
= control target key start
LH: loop header
LB: loop body
LE: loop exit
PB: predicated region body
PF: predicated region fallthrough
CT: control target
= control target key end

     0   :  { %s1832_s0 = inlined_call_operand.vmem [shape: f32[16,256], index: 0, kind: input, shape index: {}]   ;;  %s1833_s1 = inlined_call_operand.hbm [shape: bf16[256,1024], index: 1, kind: input, shape index: {}]   ;;  %s1834_s2 = inlined_call_operand.vmem [shape: f32[1,1024], index: 2, kind: input, shape index: {}]   ;;  %s1835_s3 = inlined_call_operand.hbm [shape: bf16[1024,256], index: 3, kind: input, shape index: {}]   ;;  %s1836_s4 = inlined_call_operand.vmem [shape: f32[1,256], index: 4, kind: input, shape index: {}]   ;;  %s1837_s5 = inlined_call_operand.vmem [shape: f32[1,256], index: 5, kind: input, shape index: {}]   ;;  %s1838_s6 = inlined_call_operand.vmem [shape: f32[1,256], index: 6, kind: input, shape index: {}]   ;;  %s1839_s7 = inlined_call_operand.vmem [shape: bf16[16,256], index: 7, kind: output, shape index: {}]  }
   0x1   :  { %1844 = sst [smem:[#allocation15_spill]] %s1833_s1 }
   0x2   :  { %12 = vsyncpa [#allocation5], 0 }
   0x3   :  { %14 = vsyncpa [#allocation5 + $0x1], 0 }
   0x4   :  { %15 = vsyncpa [#allocation7], 0 }
   0x5   :  { %17 = vsyncpa [#allocation7 + $0x1], 0  ;;  %s1562_s24 = smov 0   ;;  %s1564_s25 = smov 0  }
   0x6   :  { %s1566_s26 = smov 0   ;;  %s1568_s27 = smov 0  }
   0x7   :  { %s1570_s28 = smov 0   ;;  %s1572_s29 = smov 0  }
   0x8   :  { %s1574_s30 = smov 0   ;;  %s1576_s8 = smov 0  }
   0x9 LB: > { %1845 = sst [smem:[#allocation10_spill]] %s1494_s26  ;;  %s1106_s9 = sadd.s32 4294967295, %s1514_s8   ;;  %s1514_s8 = sphi %s1576_s8, %s23_s8   ;;  %s1510_s30 = sphi %s1574_s30, %s1860_s30   ;;  %s1506_s29 = sphi %s1572_s29, %s1864_s29   ;;  %s1502_s28 = sphi %s1570_s28, %s1858_s28   ;;  %s1498_s27 = sphi %s1568_s27, %s1863_s27   ;;  %s1494_s26 = sphi %s1566_s26, %s1857_s26   ;;  %s1490_s25 = sphi %s1564_s25, %s1862_s25   ;;  %s1486_s24 = sphi %s1562_s24, %s1861_s24  }
   0xa   : > { %1846 = sst [smem:[#allocation11_spill]] %s1510_s30  ;;  %s32_s10 = sadd.s32 1, %s1506_s29 }
   0xb   : > { %p33_p0 = scmp.ge.s32.totalorder %s32_s10, 4  ;;  %s35_s11 = sadd.s32 1, %s1510_s30 }
   0xc   : > { %s68_s12 = sadd.s32 1, %s1494_s26  ;;  %p75_p1 = scmp.ne.s32.totalorder %s1494_s26, %s1490_s25 }
   0xd   : > { %s1866_s10 = smov (%p33_p0, %s32_s10), 0  ;;  %s1868_s11 = smov (!%p33_p0, %s35_s11), %s1510_s30 }
   0xe   : > { %1847 = sst [smem:[#allocation12_spill]] %s1866_s10  ;;  %s65_s13 = ssub.s32 %s1506_s29, %s1866_s10 }
   0xf   : > { %p76_p2 = scmp.eq.s32.totalorder %s1514_s8, 0  ;;  %p37_p3 = scmp.ge.s32.totalorder %s1868_s11, 2 }
  0x10   : > { %p66_p4 = scmp.eq.s32.totalorder %s65_s13, 0  ;;  %p81_p6 = scmp.ne.s32.totalorder %s1490_s25, %s1486_s24 }
  0x11   : > { %p1612_p5 = por %p76_p2, %p75_p1  ;;  %s1870_s11 = smov (%p37_p3, %s1868_s11), 0 }
  0x12   : > { %1849 = sst [smem:[#allocation13_spill]] %s1870_s11  ;;  %p82_p7 = scmp.eq.s32.totalorder %s1106_s9, 0 }
  0x13   : > { %s1620_s15 = scalar_select %p66_p4, %s1494_s26, %s68_s12  }
  0x14   : > { %p1215_p8 = scmp.lt.s32.totalorder %s1514_s8, 8  ;;  %s1624_s16 = sand.u32 1, %s1494_s26  }
  0x15   : > { %1850 = sst [smem:[#allocation14_spill]] %s1620_s15  ;;  %p1626_p9 = por %p82_p7, %p81_p6 }
  0x16   : > { %s1840_s18 = sshll.u32 %s1624_s16, 8  ;;  %s1197_s19 = sshll.u32 %s1506_s29, 7 }
  0x17   : > { %s1852_s1 = sld [smem:[#allocation15_spill]]  ;;  %s267_s23 = scalar_lea.vmem [#allocation4], %s1840_s18 }
  0x18   : > { %s274_s24 = sshll.u32 %s267_s23, 4  ;;  %p1639_p10 = pnand %p1215_p8, %p1612_p5  ;;  %s275_s24 = int_to_ptr.vmem [resolvable:$true] %s274_s24 }
  0x19   : > { %p1117_p11 = scmp.ge.s32.totalorder %s1514_s8, 1  ;;  %s264_s12 = scalar_lea.sflag [#allocation5], %s1624_s16 }
  0x1a   : > { %p1390_p12 = pneg %p1639_p10  ;;  %s1401_s13 = scalar_lea.vmem %s275_s24, 4096 }
  0x1b   : > { %p1402_p13 = scmp.ne.s32.totalorder %s275_s24, %s1401_s13 }
  0x1d   : > { %s273_s22 = scalar_lea.hbm %s1852_s1, %s1197_s19  ;;  %p1404_p0 = pnand %p1402_p13, %p1390_p12 }
  0x1e   : > { %s1516_s19 = smov [#allocation4]  }
  0x1f   : > { %p1405_p1 = pneg %p1404_p0  ;;  %s1406_s20 = sshll.u32 %s1516_s19, 4  ;;  %s1407_s20 = int_to_ptr.vmem [resolvable:$false] %s1406_s20 }
  0x20   : > { %s1408_s14 = scalar_lea.vmem %s1407_s20, 8192  ;;  %p1409_p2 = scmp.lt.s32.totalorder %s275_s24, %s1407_s20 }
  0x21   : > { %p1410_p3 = scmp.lt.s32.totalorder %s1408_s14, %s1401_s13 }
  0x23   : > { %p1411_p4 = por %p1410_p3, %p1409_p2 }
  0x25   : > { %p1412_p5 = pnand %p1411_p4, %p1405_p1 }
  0x27   : > { %1415 = shalt.err (!%p1412_p5)
}
  0x28   : > { %s1517_s21 = smov 512   ;;  %s1518_s23 = smov 128  }
  0x29   : > { %s1519_s18 = smov 8   ;;  %p312_p6 = scmp.lt.s32.totalorder %s1514_s8, 9 }
  0x2a   : > { %1211 = dma.hbm_to_vmem [thread:$0]  (!%p1639_p10), %s273_s22, 4096, %s275_s24, %s264_s12, %s1517_s21, %s1518_s23, %s1519_s18  }
  0x2b   : > { %s1199_s19 = sshll.u32 %s1506_s29, 12  ;;  %p1656_p7 = pnand %p1117_p11, %p312_p6 }
  0x2c   : > { %s303_s1 = scalar_lea.hbm %s1835_s3, %s1199_s19  ;;  %s1855_s11 = sshll.u32 %s1624_s16, 8 }
  0x2d   : > { %s296_s10 = scalar_lea.vmem [#allocation6], %s1855_s11  ;;  %s293_s15 = scalar_lea.sflag [#allocation7], %s1624_s16 }
  0x2e   : > { %s304_s30 = sshll.u32 %s296_s10, 4  ;;  %s1520_s22 = smov [#allocation6]   ;;  %s305_s30 = int_to_ptr.vmem [resolvable:$true] %s304_s30 }
  0x2f   : > { %s1429_s26 = scalar_lea.vmem %s305_s30, 4096  ;;  %s1434_s24 = sshll.u32 %s1520_s22, 4  ;;  %s1435_s24 = int_to_ptr.vmem [resolvable:$false] %s1434_s24 }
  0x30   : > { %p1430_p8 = scmp.ne.s32.totalorder %s305_s30, %s1429_s26  ;;  %s1436_s12 = scalar_lea.vmem %s1435_s24, 8192 }
  0x31   : > { %p1437_p11 = scmp.lt.s32.totalorder %s305_s30, %s1435_s24  ;;  %p1438_p1 = scmp.lt.s32.totalorder %s1436_s12, %s1429_s26 }
  0x32   : > { %p1432_p13 = pnand %p1430_p8, %p1390_p12 }
  0x33   : > { %p1439_p2 = por %p1438_p1, %p1437_p11 }
  0x34   : > { %p1433_p0 = pneg %p1432_p13 }
  0x36   : > { %p1440_p3 = pnand %p1439_p2, %p1433_p0 }
  0x38   : > { %1443 = shalt.err (!%p1440_p3)
}
  0x39   : > { %1214 = dma.hbm_to_vmem [thread:$0]  (!%p1639_p10), %s303_s1, 4096, %s305_s30, %s293_s15, %s1518_s23, %s1518_s23, %s1519_s18  }
  0x3a   : > { %316 = sbr.rel (%p1656_p7) target bundleno = 882 (0x372), region = 48  ;;  %s318_s10 = sand.u32 (!%p1656_p7), 1, %s1490_s25  }
  0x3b   : > { %s1118_s11 = sshll.u32 (!%p1656_p7), %s318_s10, 8  ;;  %s319_s16 = scalar_lea.sflag (!%p1656_p7), [#allocation5], %s318_s10 }
  0x3c   : > { %s1674_s21 = scalar_lea.vmem (!%p1656_p7), [#allocation4], %s1118_s11 }
  0x3f   : > { %1477 = dma.done.wait (%p1626_p9), %s319_s16, 4096  }
  0x40   : > { %1479 = vsyncadd (%p1626_p9), %s319_s16, 4294963200  ;;  %s328_s26 = scalar_lea.sflag [#allocation7], %s318_s10  ;;  %s1680_s19 = scalar_lea.vmem [#allocation6], %s1118_s11 }
  0x41   : > { %1481 = dma.done.wait (%p1626_p9), %s328_s26, 4096  }
  0x42   : > { %1483 = vsyncadd (%p1626_p9), %s328_s26, 4294963200  ;;  %p376_p10 = scmp.lt.s32.totalorder %s1502_s28, 1  ;;  %s1122_s1 = sshll.u32 %s1498_s27, 1 }
  0x43   : > { %p383_p12 = scmp.lt.s32.totalorder %s1122_s1, 7  ;;  %p1125_p9 = scmp.ne.s32.totalorder %s1498_s27, 0 }
  0x44   : > { %s1872_s28 = smov (!%p376_p10, %s1502_s28), 1 }
  0x45   : > { %s1874_s1 = smov (!%p383_p12, %s1122_s1), 7  ;;  %s1200_s30 = sshll.u32 %s1872_s28, 4 }
  0x46   : > { %s1201_s15 = sshll.u32 %s1872_s28, 3  ;;  %s1694_s23 = scalar_lea.vmem %s1832_s0, %s1200_s30 }
  0x47   : > { %s385_s20 = scalar_lea.vmem %s1834_s2, %s1874_s1  ;;  %s1703_s24 = scalar_lea.vmem %s1839_s7, %s1201_s15 }
  0x48   : > { %396 = sbr.rel (%p1125_p9) target bundleno = 81 (0x51), region = 60 }
  0x4d   : > { %v399_v0 = vld [vmem:[%s1694_s23] sm:$0xff]  ;;  %v400_v1 = vld [vmem:[%s1694_s23 + $0x8] sm:$0xff]  ;;  %v1521_v2 = vmov 0.0  }
  0x4e   : > { %397 = vst [vmem:[#allocation2] sm:$0xff] %v1521_v2  ;;  %398 = vst [vmem:[#allocation2 + $0x8] sm:$0xff] %v1521_v2  ;;  %v1202_v3 = vpack.c.bf16 %v400_v1, %v399_v0 }
  0x50   : > { %409 = vst [vmem:[#allocation3] sm:$0xff] %v1202_v3 }
  0x51 PF: > { %v1284_v4 = vld [vmem:[%s1674_s21 + $0x74] ss:$8 sps:$4 sm:$0xff]   ;;  %v1286_v5 = vld [vmem:[%s1674_s21 + $0x70] ss:$8 sps:$4 sm:$0xff]   ;;  %v1287_v6 = vld [vmem:[%s1674_s21 + $0x64] ss:$8 sps:$4 sm:$0xff]  }
  0x52   : > { %622 = vmatprep.subr.bf16.mxu0 %v1284_v4  ;;  %v1289_v7 = vld [vmem:[%s1674_s21 + $0x60] ss:$8 sps:$4 sm:$0xff]   ;;  %v1290_v8 = vld [vmem:[%s1674_s21 + $0x54] ss:$8 sps:$4 sm:$0xff]   ;;  %v1292_v9 = vld [vmem:[%s1674_s21 + $0x50] ss:$8 sps:$4 sm:$0xff]  }
  0x53   : > { %623 = vmatpush1.bf16.msra.mxu0 %v1286_v5  ;;  %v1293_v10 = vld [vmem:[%s1674_s21 + $0x44] ss:$8 sps:$4 sm:$0xff]   ;;  %v1295_v11 = vld [vmem:[%s1674_s21 + $0x40] ss:$8 sps:$4 sm:$0xff]   ;;  %v1296_v12 = vld [vmem:[%s1674_s21 + $0x34] ss:$8 sps:$4 sm:$0xff]  }
  0x54   : > { %624 = vmatprep.subr.bf16.mxu0 %v1287_v6  ;;  %v1298_v13 = vld [vmem:[%s1674_s21 + $0x30] ss:$8 sps:$4 sm:$0xff]   ;;  %v1299_v14 = vld [vmem:[%s1674_s21 + $0x24] ss:$8 sps:$4 sm:$0xff]   ;;  %v1301_v15 = vld [vmem:[%s1674_s21 + $0x20] ss:$8 sps:$4 sm:$0xff]  }
  0x55   : > { %v1302_v16 = vld [vmem:[%s1674_s21 + $0x14] ss:$8 sps:$4 sm:$0xff]   ;;  %v1304_v17 = vld [vmem:[%s1674_s21 + $0x10] ss:$8 sps:$4 sm:$0xff]   ;;  %v1337_v22 = vld [vmem:[%s1680_s19 + $0x64] ss:$8 sps:$4 sm:$0xff]  }
  0x56   : > { %v1334_v20 = vld [vmem:[%s1680_s19 + $0x74] ss:$8 sps:$4 sm:$0xff]   ;;  %v1336_v21 = vld [vmem:[%s1680_s19 + $0x70] ss:$8 sps:$4 sm:$0xff]   ;;  %v1305_v23 = vld [vmem:[%s1674_s21 + $0x4] ss:$8 sps:$4 sm:$0xff]  }
  0x57   : > { %625 = vmatpush1.bf16.msra.mxu0 %v1289_v7  ;;  %v1722_v18 = vld [vmem:[#allocation3] sm:$0xff]  ;;  %861 = vmatprep.subr.bf16.mxu1 %v1334_v20  ;;  %v1307_v24 = vld [vmem:[%s1674_s21] ss:$8 sps:$4 sm:$0xff]   ;;  %v1343_v30 = vld [vmem:[%s1680_s19 + $0x44] ss:$8 sps:$4 sm:$0xff]   ;;  %v445_v7 = vlaneseq  ;;  %p1193_p4 = scmp.ne.s32.totalorder %s1498_s27, 3 }
  0x58   : > { %626 = vmatprep.subr.bf16.mxu0 %v1290_v8  ;;  %v1128_v19 = vcombine.high %v1722_v18, %v1722_v18  ;;  %862 = vmatpush1.bf16.msra.mxu1 %v1336_v21  ;;  %v1339_v25 = vld [vmem:[%s1680_s19 + $0x60] ss:$8 sps:$4 sm:$0xff]   ;;  %v1340_v26 = vld [vmem:[%s1680_s19 + $0x54] ss:$8 sps:$4 sm:$0xff]   ;;  %v1310_v28 = vld [vmem:[%s1674_s21 + $0xf0] ss:$8 sps:$4 sm:$0xff]   ;;  %v1127_v59 = vcombine.low %v1722_v18, %v1722_v18 }
  0x59   : > { %863 = vmatprep.subr.bf16.mxu1 %v1337_v22  ;;  %v1308_v27 = vld [vmem:[%s1674_s21 + $0xf4] ss:$8 sps:$4 sm:$0xff]   ;;  %v1342_v29 = vld [vmem:[%s1680_s19 + $0x50] ss:$8 sps:$4 sm:$0xff]   ;;  %v1311_v31 = vld [vmem:[%s1674_s21 + $0xe4] ss:$8 sps:$4 sm:$0xff]  }
  0x5a   : > { %654 = vmatprep.mubr.bf16.mxu0 %v1128_v19  ;;  %v1313_v32 = vld [vmem:[%s1674_s21 + $0xe0] ss:$8 sps:$4 sm:$0xff]   ;;  %v1346_v34 = vld [vmem:[%s1680_s19 + $0x34] ss:$8 sps:$4 sm:$0xff]   ;;  %v1348_v36 = vld [vmem:[%s1680_s19 + $0x30] ss:$8 sps:$4 sm:$0xff]  }
  0x5b   : > { %627 = vmatpush1.bf16.msra.mxu0 %v1292_v9  ;;  %v1345_v33 = vld [vmem:[%s1680_s19 + $0x40] ss:$8 sps:$4 sm:$0xff]   ;;  %v1314_v35 = vld [vmem:[%s1674_s21 + $0xd4] ss:$8 sps:$4 sm:$0xff]   ;;  %v1316_v37 = vld [vmem:[%s1674_s21 + $0xd0] ss:$8 sps:$4 sm:$0xff]  }
  0x5c   : > { %628 = vmatprep.subr.bf16.mxu0 %v1293_v10  ;;  %864 = vmatpush1.bf16.msra.mxu1 %v1339_v25  ;;  %v1349_v38 = vld [vmem:[%s1680_s19 + $0x24] ss:$8 sps:$4 sm:$0xff]   ;;  %v1351_v40 = vld [vmem:[%s1680_s19 + $0x20] ss:$8 sps:$4 sm:$0xff]   ;;  %v1352_v42 = vld [vmem:[%s1680_s19 + $0x14] ss:$8 sps:$4 sm:$0xff]  }
  0x5d   : > { %865 = vmatprep.subr.bf16.mxu1 %v1340_v26  ;;  %v1317_v39 = vld [vmem:[%s1674_s21 + $0xc4] ss:$8 sps:$4 sm:$0xff]   ;;  %v1319_v41 = vld [vmem:[%s1674_s21 + $0xc0] ss:$8 sps:$4 sm:$0xff]   ;;  %v1320_v43 = vld [vmem:[%s1674_s21 + $0xb4] ss:$8 sps:$4 sm:$0xff]  }
  0x5e   : > { %v1354_v44 = vld [vmem:[%s1680_s19 + $0x10] ss:$8 sps:$4 sm:$0xff]   ;;  %v1355_v46 = vld [vmem:[%s1680_s19 + $0x4] ss:$8 sps:$4 sm:$0xff]   ;;  %v1357_v48 = vld [vmem:[%s1680_s19] ss:$8 sps:$4 sm:$0xff]  }
  0x5f   : > { %629 = vmatpush1.bf16.msra.mxu0 %v1295_v11  ;;  %v1322_v45 = vld [vmem:[%s1674_s21 + $0xb0] ss:$8 sps:$4 sm:$0xff]   ;;  %v1323_v47 = vld [vmem:[%s1674_s21 + $0xa4] ss:$8 sps:$4 sm:$0xff]   ;;  %v1325_v49 = vld [vmem:[%s1674_s21 + $0xa0] ss:$8 sps:$4 sm:$0xff]  }
  0x60   : > { %630 = vmatprep.subr.bf16.mxu0 %v1296_v12  ;;  %866 = vmatpush1.bf16.msra.mxu1 %v1342_v29  ;;  %v1358_v50 = vld [vmem:[%s1680_s19 + $0xf4] ss:$8 sps:$4 sm:$0xff]   ;;  %v1360_v52 = vld [vmem:[%s1680_s19 + $0xf0] ss:$8 sps:$4 sm:$0xff]   ;;  %v1361_v54 = vld [vmem:[%s1680_s19 + $0xe4] ss:$8 sps:$4 sm:$0xff]  }
  0x61   : > { %867 = vmatprep.subr.bf16.mxu1 %v1343_v30  ;;  %v1326_v51 = vld [vmem:[%s1674_s21 + $0x94] ss:$8 sps:$4 sm:$0xff]   ;;  %v1328_v53 = vld [vmem:[%s1674_s21 + $0x90] ss:$8 sps:$4 sm:$0xff]   ;;  %v1329_v55 = vld [vmem:[%s1674_s21 + $0x84] ss:$8 sps:$4 sm:$0xff]  }
  0x62   : > { %v1363_v56 = vld [vmem:[%s1680_s19 + $0xe0] ss:$8 sps:$4 sm:$0xff]   ;;  %v1364_v58 = vld [vmem:[%s1680_s19 + $0xd4] ss:$8 sps:$4 sm:$0xff]   ;;  %v1366_v60 = vld [vmem:[%s1680_s19 + $0xd0] ss:$8 sps:$4 sm:$0xff]  }
  0x63   : > { %631 = vmatpush1.bf16.msra.mxu0 %v1298_v13  ;;  %v1331_v57 = vld [vmem:[%s1674_s21 + $0x80] ss:$8 sps:$4 sm:$0xff]   ;;  %v1367_v61 = vld [vmem:[%s1680_s19 + $0xc4] ss:$8 sps:$4 sm:$0xff]   ;;  %v1370_v63 = vld [vmem:[%s1680_s19 + $0xb4] ss:$8 sps:$4 sm:$0xff]  }
  0x64   : > { %632 = vmatprep.subr.bf16.mxu0 %v1299_v14  ;;  %868 = vmatpush1.bf16.msra.mxu1 %v1345_v33  ;;  %v1369_v62 = vld [vmem:[%s1680_s19 + $0xc0] ss:$8 sps:$4 sm:$0xff]   ;;  %v1372_v0 = vld [vmem:[%s1680_s19 + $0xb0] ss:$8 sps:$4 sm:$0xff]   ;;  %v1373_v1 = vld [vmem:[%s1680_s19 + $0xa4] ss:$8 sps:$4 sm:$0xff]  }
  0x65   : > { %869 = vmatprep.subr.bf16.mxu1 %v1346_v34  ;;  %v1375_v2 = vld [vmem:[%s1680_s19 + $0xa0] ss:$8 sps:$4 sm:$0xff]   ;;  %v1376_v3 = vld [vmem:[%s1680_s19 + $0x94] ss:$8 sps:$4 sm:$0xff]   ;;  %v1378_v4 = vld [vmem:[%s1680_s19 + $0x90] ss:$8 sps:$4 sm:$0xff]  }
  0x66   : > { %v1379_v5 = vld [vmem:[%s1680_s19 + $0x84] ss:$8 sps:$4 sm:$0xff]   ;;  %v1381_v6 = vld [vmem:[%s1680_s19 + $0x80] ss:$8 sps:$4 sm:$0xff]   ;;  %v446_v8 = vshrl.u32 %v445_v7, 7  ;;  %v666_v26 = vld [vmem:[#allocation2 + $0x8] sm:$0xff] }
  0x67   : > { %633 = vmatpush1.bf16.msra.mxu0 %v1301_v15  ;;  %v443_v10 = vld [vmem:[%s385_s20] sm:$0x3] }
  0x68   : > { %634 = vmatprep.subr.bf16.mxu0 %v1302_v16  ;;  %870 = vmatpush1.bf16.msra.mxu1 %v1348_v36  ;;  %v1778_v9 = vsub.s32 0, %v446_v8  ;;  %v1785_v11 = vsub.s32 1, %v446_v8 }
  0x69   : > { %871 = vmatprep.subr.bf16.mxu1 %v1349_v38 }
  0x6a   : > { %v448_v12 = vrot.slane %v443_v10, %v1778_v9  ;;  %v452_v13 = vrot.slane %v443_v10, %v1785_v11 }
  0x6b   : > { %635 = vmatpush1.bf16.msra.mxu0 %v1304_v17 }
  0x6c   : > { %636 = vmatprep.subr.bf16.mxu0 %v1305_v23  ;;  %872 = vmatpush1.bf16.msra.mxu1 %v1351_v40 }
  0x6d   : > { %873 = vmatprep.subr.bf16.mxu1 %v1352_v42 }
  0x6f   : > { %637 = vmatpush1.bf16.msra.mxu0 %v1307_v24  ;;  %v665_v24 = vld [vmem:[#allocation2] sm:$0xff] }
  0x70   : > { %638 = vmatprep.subr.bf16.mxu0 %v1308_v27  ;;  %874 = vmatpush1.bf16.msra.mxu1 %v1354_v44 }
  0x71   : > { %875 = vmatprep.subr.bf16.mxu1 %v1355_v46 }
  0x73   : > { %639 = vmatpush2.bf16.msra.mxu0 %v1310_v28 }
  0x74   : > { %640 = vmatprep.subr.bf16.mxu0 %v1311_v31  ;;  %876 = vmatpush1.bf16.msra.mxu1 %v1357_v48 }
  0x75   : > { %877 = vmatprep.subr.bf16.mxu1 %v1358_v50 }
  0x77   : > { %641 = vmatpush2.bf16.msra.mxu0 %v1313_v32 }
  0x78   : > { %642 = vmatprep.subr.bf16.mxu0 %v1314_v35  ;;  %878 = vmatpush2.bf16.msra.mxu1 %v1360_v52 }
  0x79   : > { %879 = vmatprep.subr.bf16.mxu1 %v1361_v54 }
  0x7b   : > { %643 = vmatpush2.bf16.msra.mxu0 %v1316_v37 }
  0x7c   : > { %644 = vmatprep.subr.bf16.mxu0 %v1317_v39  ;;  %880 = vmatpush2.bf16.msra.mxu1 %v1363_v56 }
  0x7d   : > { %881 = vmatprep.subr.bf16.mxu1 %v1364_v58 }
  0x7f   : > { %645 = vmatpush2.bf16.msra.mxu0 %v1319_v41 }
  0x80   : > { %646 = vmatprep.subr.bf16.mxu0 %v1320_v43  ;;  %882 = vmatpush2.bf16.msra.mxu1 %v1366_v60 }
  0x81   : > { %883 = vmatprep.subr.bf16.mxu1 %v1367_v61 }
  0x83   : > { %647 = vmatpush2.bf16.msra.mxu0 %v1322_v45 }
  0x84   : > { %648 = vmatprep.subr.bf16.mxu0 %v1323_v47  ;;  %884 = vmatpush2.bf16.msra.mxu1 %v1369_v62 }
  0x85   : > { %885 = vmatprep.subr.bf16.mxu1 %v1370_v63 }
  0x87   : > { %649 = vmatpush2.bf16.msra.mxu0 %v1325_v49 }
  0x88   : > { %650 = vmatprep.subr.bf16.mxu0 %v1326_v51  ;;  %886 = vmatpush2.bf16.msra.mxu1 %v1372_v0 }
  0x89   : > { %887 = vmatprep.subr.bf16.mxu1 %v1373_v1 }
  0x8b   : > { %651 = vmatpush2.bf16.msra.mxu0 %v1328_v53 }
  0x8c   : > { %652 = vmatprep.subr.bf16.mxu0 %v1329_v55  ;;  %888 = vmatpush2.bf16.msra.mxu1 %v1375_v2 }
  0x8d   : > { %889 = vmatprep.subr.bf16.mxu1 %v1376_v3 }
  0x8f   : > { %653 = vmatpush2.bf16.msra.mxu0 %v1331_v57 }
  0x90   : > { %890 = vmatpush2.bf16.msra.mxu1 %v1378_v4 }
  0x91   : > { %891 = vmatprep.subr.bf16.mxu1 %v1379_v5 }
  0x92   : > { %655 = vmatmul.mubr.bf16.vlgmr.msra.gmra.mxu0 %v1127_v59 }
  0x94   : > { %892 = vmatpush2.bf16.msra.mxu1 %v1381_v6 }
 0x152   : > { %v656_v14 = vpop.f32.mrf.mxu0 }
 0x153   : > { %v657_v15 = vadd.f32 %v656_v14, %v448_v12 }
 0x154   : > { %v658_v16 = vpop.f32.mrf.mxu0 }
 0x155   : > { %v659_v17 = vadd.f32 %v658_v16, %v452_v13  ;;  %1382 = vtanh.f32 %v657_v15 }
 0x156   : > { %v660_v18 = vpop.f32.mrf.mxu0 }
 0x157   : > { %1384 = vtanh.f32 %v659_v17 }
 0x158   : > { %v661_v19 = vpop.f32.mrf.mxu0 }
 0x162   : > { %v1383_v20 = vpop.eup %1382 }
 0x163   : > { %v667_v23 = vpack.c.bf16 %v1383_v20, %v1383_v20 }
 0x164   : > { %v1385_v21 = vpop.eup %1384 }
 0x165   : > { %v668_v22 = vpack.c.bf16 %v1385_v21, %v1385_v21 }
 0x167   : > { %893 = vmatprep.mubr.bf16.mxu1 %v668_v22 }
 0x168   : > { %894 = vmatmul.mubr.bf16.vlgmr.msra.gmra.mxu1 %v667_v23 }
 0x228   : > { %v895_v25 = vpop.f32.mrf.mxu1 }
 0x229   : > { %v902_v27 = vadd.f32 %v895_v25, %v665_v24 }
 0x22a   : > { %v897_v28 = vpop.f32.mrf.mxu1  ;;  %909 = sbr.rel (%p1193_p4) target bundleno = 882 (0x372), region = 64 }
 0x22b   : > { %904 = vst [vmem:[#allocation2] sm:$0xff] %v902_v27  ;;  %v903_v29 = vadd.f32 %v897_v28, %v666_v26 }
 0x22c   : > { %v899_v30 = vpop.f32.mrf.mxu1 }
 0x22d   : > { %905 = vst [vmem:[#allocation2 + $0x8] sm:$0xff] %v903_v29 }
 0x22e   : > { %v900_v31 = vpop.f32.mrf.mxu1 }
 0x22f   : > { %v910_v32 = vld [vmem:[%s1694_s23] sm:$0xff]  ;;  %v911_v33 = vld [vmem:[%s1694_s23 + $0x8] sm:$0xff] }
 0x230   : > { %v916_v37 = vld [vmem:[%s1836_s4] sm:$0x3] }
 0x231   : > { %v921_v39 = vrot.slane %v916_v37, %v1778_v9  ;;  %v925_v40 = vrot.slane %v916_v37, %v1785_v11  ;;  %v947_v54 = vld [vmem:[%s1837_s5] sm:$0x3] }
 0x232   : > { %v912_v34 = vld [vmem:[#allocation2] sm:$0xff]  ;;  %v952_v56 = vrot.slane %v947_v54, %v1778_v9  ;;  %v956_v57 = vrot.slane %v947_v54, %v1785_v11 }
 0x233   : > { %v914_v36 = vadd.f32 %v912_v34, %v910_v32  ;;  %v961_v55 = vld [vmem:[%s1838_s6] sm:$0x3] }
 0x234   : > { %v913_v35 = vld [vmem:[#allocation2 + $0x8] sm:$0xff]  ;;  %v966_v59 = vrot.slane %v961_v55, %v1778_v9  ;;  %v970_v60 = vrot.slane %v961_v55, %v1785_v11 }
 0x235   : > { %v915_v38 = vadd.f32 %v913_v35, %v911_v33  ;;  %v928_v41 = vadd.f32 %v921_v39, %v914_v36 }
 0x237   : > { %v929_v42 = vadd.f32 %v925_v40, %v915_v38 }
 0x239   : > { %v930_v43 = vadd.f32 %v929_v42, %v928_v41 }
 0x23b   : > { %931 = vadd.xlane.f32.xlu0 %v930_v43 }
 0x2c4   : > { %v932_v44 = vpop.xlane.xlu0 %931 }
 0x2c5   : > { %v934_v45 = vmul.f32 0.00390625, %v932_v44 }
 0x2c7   : > { %v935_v46 = vsub.f32 %v928_v41, %v934_v45  ;;  %v936_v47 = vsub.f32 %v929_v42, %v934_v45 }
 0x2c9   : > { %v937_v48 = vmul.f32 %v935_v46, %v935_v46  ;;  %v938_v49 = vmul.f32 %v936_v47, %v936_v47 }
 0x2cb   : > { %v939_v50 = vadd.f32 %v938_v49, %v937_v48 }
 0x2cd   : > { %940 = vadd.xlane.f32.xlu0 %v939_v50 }
 0x356   : > { %v941_v51 = vpop.xlane.xlu0 %940 }
 0x357   : > { %v942_v52 = vmul.f32 0.00390625, %v941_v51 }
 0x359   : > { %v943_v53 = vadd.f32 1e-05, %v942_v52 }
 0x35b   : > { %1386 = vrsqrt.f32 %v943_v53 }
 0x368   : > { %v1387_v58 = vpop.eup %1386 }
 0x369   : > { %v945_v61 = vmul.f32 %v1387_v58, %v935_v46  ;;  %v946_v62 = vmul.f32 %v1387_v58, %v936_v47 }
 0x36b   : > { %v959_v63 = vmul.f32 %v952_v56, %v945_v61  ;;  %v960_v0 = vmul.f32 %v956_v57, %v946_v62 }
 0x36d   : > { %v973_v1 = vadd.f32 %v966_v59, %v959_v63  ;;  %v974_v2 = vadd.f32 %v970_v60, %v960_v0 }
 0x36f   : > { %v1203_v3 = vpack.c.bf16 %v974_v2, %v973_v1 }
 0x371   : > { %983 = vst [vmem:[%s1703_s24] sm:$0xff] %v1203_v3 }
 0x372 PF: > { %s23_s8 = sadd.s32 1, %s1514_s8   ;;  %s1856_s19 = sld [smem:[#allocation10_spill]] }
 0x373   : > { %p20_p5 = scmp.ge.s32.totalorder %s23_s8, 10   ;;  %s1857_s26 = sld [smem:[#allocation14_spill]] }
 0x374   : > { %s1858_s28 = sld [smem:[#allocation11_spill]]  ;;  %s1861_s24 = smov %s1490_s25 }
 0x375   : > { %s1859_s1 = sld [smem:[#allocation12_spill]]  ;;  %s1863_s27 = smov %s1506_s29 }
 0x376   : > { %s1860_s30 = sld [smem:[#allocation13_spill]] }
 0x377   :  { %22 = sbr.rel (!%p20_p5) target bundleno = 9 (0x9), region = 115 }
 0x378   : > { %s1862_s25 = smov %s1856_s19 }
 0x37b   : > { %s1864_s29 = smov %s1859_s1 }
 0x37c   :  { %1005 = vsyncpa [#allocation5], 1 }
 0x37d   :  { %1007 = vsyncpa [#allocation5 + $0x1], 1 }
 0x37e   :  { %1008 = vsyncpa [#allocation7], 1 }
 0x37f   :  { %1010 = vsyncpa [#allocation7 + $0x1], 1 }

</bundles_post_ra>
